<compile_context>
chip_gen: v7x
topology: tpu7x:2x2x1
jax: 0.10.0
libtpu: 0.0.40
codegen_flags: <defaults>
</compile_context>

<pallas_src>
import functools

import jax
import jax.numpy as jnp
from jax import lax
from jax.experimental import pallas as pl
from jax.experimental.pallas import tpu as pltpu


def _round_up(n: int, m: int) -> int:
    return ((n + m - 1) // m) * m


def _gaussian_kernel(x_ref, w_ref, b_ref, noise_ref, mu_ref, var_ref, z_ref):
    """One batch tile, batch on the LANE axis.

    x_ref:     (TM, in_dim)        input rows for this tile
    w_ref:     (2*z_dim, in_dim)   [W_mu; W_var] (torch Linear layout, VMEM-resident)
    b_ref:     (2*z_dim, 1)        [b_mu; b_var] (VMEM-resident)
    noise_ref: (z_dim, TM)         standard-normal noise, lane-dense
    mu/var/z:  (z_dim, TM)         lane-dense outputs
    """
    z_dim = mu_ref.shape[0]

    # Single fused MXU matmul, result already transposed (batch on lanes):
    #   yT[o, b] = sum_k W_cat[o, k] * x[b, k]          (A @ B^T)
    yT = lax.dot_general(
        w_ref[...], x_ref[...],
        dimension_numbers=(((1,), (1,)), ((), ())),
        preferred_element_type=jnp.float32,
    ) + b_ref[...]

    # Sublane splits at a multiple of 8 -> plain vreg selection, no lane shuffles.
    mu = yT[:z_dim, :]
    v_pre = yT[z_dim:, :]

    # Numerically stable softplus: max(v, 0) + log1p(exp(-|v|)).
    var = jnp.maximum(v_pre, 0.0) + jnp.log1p(jnp.exp(-jnp.abs(v_pre)))

    mu_ref[...] = mu
    var_ref[...] = var
    z_ref[...] = mu + noise_ref[...] * jnp.sqrt(var + 1e-10)


def fuse_params(w_mu, b_mu, w_var, b_var):
    """Fuse the two nn.Linear layers once (hoisted out of the per-call path).

    w_*: (z_dim, in_dim) in torch Linear layout; b_*: (z_dim,).
    Returns w_cat (2*z_dim, in_dim), b_cat (2*z_dim, 1).
    """
    w_cat = jnp.concatenate([w_mu, w_var], axis=0)
    b_cat = jnp.concatenate([b_mu.reshape(-1), b_var.reshape(-1)]).reshape(-1, 1)
    return w_cat, b_cat


def _pick_tile(batch: int, block_m: int) -> int:
    """Batch-tile size: lane-dense (multiple of 128), big enough to amortize per-step
    overhead, but keeping >= 2 grid steps when possible so the 'parallel' batch axis
    can shard across both TensorCores on v7x."""
    tm = _round_up(min(block_m, batch), 128)
    if batch > 128:
        tm = min(tm, max(128, _round_up(pl.cdiv(batch, 2), 128)))
    return tm


@functools.partial(jax.jit, static_argnames=("block_m",))
def gaussian_forward(x, w_cat, b_cat, noise, *, block_m=2048):
    """Gaussian forward pass.

    x:     (B, in_dim) f32
    w_cat: (2*z_dim, in_dim) f32   from fuse_params()
    b_cat: (2*z_dim, 1) f32        from fuse_params()
    noise: (z_dim, B) f32          standard-normal reparameterization noise
    Returns (mu, var, z), each (B, z_dim) f32.
    """
    B, in_dim = x.shape
    two_z = w_cat.shape[0]
    z_dim = two_z // 2

    tm = _pick_tile(B, block_m)
    grid = (pl.cdiv(B, tm),)  # partial last tile handled by Pallas masking; no host pad

    out_sds = jax.ShapeDtypeStruct((z_dim, B), jnp.float32)
    lane_spec = pl.BlockSpec((z_dim, tm), lambda i: (0, i))

    mu_t, var_t, z_t = pl.pallas_call(
        _gaussian_kernel,
        out_shape=(out_sds, out_sds, out_sds),
        grid=grid,
        in_specs=[
            pl.BlockSpec((tm, in_dim), lambda i: (i, 0)),      # x tile
            pl.BlockSpec((two_z, in_dim), lambda i: (0, 0)),   # W_cat (resident)
            pl.BlockSpec((two_z, 1), lambda i: (0, 0)),        # b_cat (resident)
            lane_spec,                                         # noise tile
        ],
        out_specs=(lane_spec, lane_spec, lane_spec),
        compiler_params=pltpu.CompilerParams(
            dimension_semantics=("parallel",),                 # batch axis shards over TCs
        ),
    )(x, w_cat, b_cat, noise)

    # Only wrapper post-processing: match the torch module's (B, z_dim) convention.
    return mu_t.T, var_t.T, z_t.T


if __name__ == "__main__":
    # B deliberately not a multiple of the tile (and not of 128) to exercise the
    # masked partial last tile; tile picker yields TM=256 -> a 2-step grid.
    B, in_dim, z_dim = 300, 32, 16

    key = jax.random.PRNGKey(0)
    kx, kwm, kbm, kwv, kbv, kn = jax.random.split(key, 6)

    # Deterministic synthetic parameters (PyTorch nn.Linear-like uniform init),
    # in torch layout: weight (out_features, in_features), bias (out_features,).
    bound = 1.0 / (in_dim ** 0.5)
    x = jax.random.normal(kx, (B, in_dim), dtype=jnp.float32)
    w_mu = jax.random.uniform(kwm, (z_dim, in_dim), minval=-bound, maxval=bound, dtype=jnp.float32)
    b_mu = jax.random.uniform(kbm, (z_dim,), minval=-bound, maxval=bound, dtype=jnp.float32)
    w_var = jax.random.uniform(kwv, (z_dim, in_dim), minval=-bound, maxval=bound, dtype=jnp.float32)
    b_var = jax.random.uniform(kbv, (z_dim,), minval=-bound, maxval=bound, dtype=jnp.float32)

    # torch.randn_like equivalent, lane-dense (z_dim, B).
    noise = jax.random.normal(kn, (z_dim, B), dtype=jnp.float32)

    w_cat, b_cat = fuse_params(w_mu, b_mu, w_var, b_var)

    mu, var, z = gaussian_forward(x, w_cat, b_cat, noise)
    jax.block_until_ready((mu, var, z))

    assert mu.shape == (B, z_dim) and var.shape == (B, z_dim) and z.shape == (B, z_dim)

    # Pure-JAX reference (deterministic, including z since the noise is an input).
    mu_ref = x @ w_mu.T + b_mu
    var_ref = jax.nn.softplus(x @ w_var.T + b_var)
    z_ref = mu_ref + noise.T * jnp.sqrt(var_ref + 1e-10)

    assert jnp.allclose(mu, mu_ref, atol=1e-5, rtol=1e-5)
    assert jnp.allclose(var, var_ref, atol=1e-5, rtol=1e-5)
    assert jnp.allclose(z, z_ref, atol=1e-5, rtol=1e-5)
    assert bool(jnp.all(jnp.isfinite(z)))

    print("KERNEL_OK")
</pallas_src>

<mosaic_0001>
module attributes {stable_mosaic.version = 11 : i64} {
  func.func @_gaussian_kernel(%arg0: i32, %arg1: memref<256x32xf32, #tpu.memory_space<vmem>>, %arg2: memref<32x32xf32, #tpu.memory_space<vmem>>, %arg3: memref<32x1xf32, #tpu.memory_space<vmem>>, %arg4: memref<16x256xf32, #tpu.memory_space<vmem>>, %arg5: memref<16x256xf32, #tpu.memory_space<vmem>>, %arg6: memref<16x256xf32, #tpu.memory_space<vmem>>, %arg7: memref<16x256xf32, #tpu.memory_space<vmem>>) attributes {dimension_semantics = [#tpu.dimension_semantics<parallel>], iteration_bounds = array<i64: 2>, scalar_prefetch = 0 : i64, scratch_operands = 0 : i64, tpu.core_type = #tpu.core_type<tc>, window_params = [{transform_indices = @transform_0, window_bounds = array<i64: 256, 32>}, {pipeline_mode = #tpu.pipeline_mode<synchronous>, transform_indices = @transform_1, window_bounds = array<i64: 32, 32>}, {pipeline_mode = #tpu.pipeline_mode<synchronous>, transform_indices = @transform_2, window_bounds = array<i64: 32, 1>}, {transform_indices = @transform_3, window_bounds = array<i64: 16, 256>}, {transform_indices = @transform_4, window_bounds = array<i64: 16, 256>}, {transform_indices = @transform_5, window_bounds = array<i64: 16, 256>}, {transform_indices = @transform_6, window_bounds = array<i64: 16, 256>}]} {
    %c0 = arith.constant 0 : index
    %c0_0 = arith.constant 0 : index
    %0 = vector.load %arg2[%c0, %c0_0] : memref<32x32xf32, #tpu.memory_space<vmem>>, vector<32x32xf32>
    %c0_1 = arith.constant 0 : index
    %c0_2 = arith.constant 0 : index
    %1 = vector.load %arg1[%c0_1, %c0_2] : memref<256x32xf32, #tpu.memory_space<vmem>>, vector<256x32xf32>
    %cst = arith.constant dense<0.000000e+00> : vector<32x256xf32>
    %2 = tpu.matmul %0, %1, %cst {dimension_numbers = #tpu.dot_dimension_numbers<[1], [1], [0], [0], [0, 0, 1, 0], [], []>} : vector<32x32xf32>, vector<256x32xf32>, vector<32x256xf32> -> vector<32x256xf32>
    %c0_3 = arith.constant 0 : index
    %c0_4 = arith.constant 0 : index
    %3 = vector.load %arg3[%c0_3, %c0_4] : memref<32x1xf32, #tpu.memory_space<vmem>>, vector<32x1xf32>
    %4 = vector.broadcast %3 : vector<32x1xf32> to vector<32x256xf32>
    %5 = arith.addf %2, %4 : vector<32x256xf32>
    %6 = vector.extract_strided_slice %5 {offsets = [0, 0], sizes = [16, 256], strides = [1, 1]} : vector<32x256xf32> to vector<16x256xf32>
    %7 = vector.extract_strided_slice %5 {offsets = [16, 0], sizes = [16, 256], strides = [1, 1]} : vector<32x256xf32> to vector<16x256xf32>
    %cst_5 = arith.constant 0.000000e+00 : f32
    %8 = vector.broadcast %cst_5 : f32 to vector<16x256xf32>
    %9 = arith.maximumf %7, %8 : vector<16x256xf32>
    %10 = math.absf %7 : vector<16x256xf32>
    %cst_6 = arith.constant 0.000000e+00 : f32
    %11 = vector.broadcast %cst_6 : f32 to vector<16x256xf32>
    %12 = arith.subf %11, %10 : vector<16x256xf32>
    %13 = math.exp %12 : vector<16x256xf32>
    %14 = math.log1p %13 : vector<16x256xf32>
    %15 = arith.addf %9, %14 : vector<16x256xf32>
    %c0_7 = arith.constant 0 : index
    %c0_8 = arith.constant 0 : index
    %16 = vector.load %arg5[%c0_7, %c0_8] : memref<16x256xf32, #tpu.memory_space<vmem>>, vector<16x256xf32>
    tpu.vector_store %arg5[%c0_7, %c0_8], %6 {strides = array<i32>} : memref<16x256xf32, #tpu.memory_space<vmem>>, vector<16x256xf32>,
    %c0_9 = arith.constant 0 : index
    %c0_10 = arith.constant 0 : index
    %17 = vector.load %arg6[%c0_9, %c0_10] : memref<16x256xf32, #tpu.memory_space<vmem>>, vector<16x256xf32>
    tpu.vector_store %arg6[%c0_9, %c0_10], %15 {strides = array<i32>} : memref<16x256xf32, #tpu.memory_space<vmem>>, vector<16x256xf32>,
    %c0_11 = arith.constant 0 : index
    %c0_12 = arith.constant 0 : index
    %18 = vector.load %arg4[%c0_11, %c0_12] : memref<16x256xf32, #tpu.memory_space<vmem>>, vector<16x256xf32>
    %cst_13 = arith.constant 1.000000e-10 : f32
    %19 = vector.broadcast %cst_13 : f32 to vector<16x256xf32>
    %20 = arith.addf %15, %19 : vector<16x256xf32>
    %21 = math.sqrt %20 : vector<16x256xf32>
    %22 = arith.mulf %18, %21 : vector<16x256xf32>
    %23 = arith.addf %6, %22 : vector<16x256xf32>
    %c0_14 = arith.constant 0 : index
    %c0_15 = arith.constant 0 : index
    %24 = vector.load %arg7[%c0_14, %c0_15] : memref<16x256xf32, #tpu.memory_space<vmem>>, vector<16x256xf32>
    tpu.vector_store %arg7[%c0_14, %c0_15], %23 {strides = array<i32>} : memref<16x256xf32, #tpu.memory_space<vmem>>, vector<16x256xf32>,
    return
  }
  func.func @transform_0(%arg0: i32) -> (i32, i32) {
    %c0_i32 = arith.constant 0 : i32
    %c0_i32_0 = arith.constant 0 : i32
    return %arg0, %c0_i32 : i32, i32
  }
  func.func @transform_1(%arg0: i32) -> (i32, i32) {
    %c0_i32 = arith.constant 0 : i32
    %c0_i32_0 = arith.constant 0 : i32
    %c0_i32_1 = arith.constant 0 : i32
    return %c0_i32, %c0_i32_0 : i32, i32
  }
  func.func @transform_2(%arg0: i32) -> (i32, i32) {
    %c0_i32 = arith.constant 0 : i32
    %c0_i32_0 = arith.constant 0 : i32
    %c0_i32_1 = arith.constant 0 : i32
    return %c0_i32, %c0_i32_0 : i32, i32
  }
  func.func @transform_3(%arg0: i32) -> (i32, i32) {
    %c0_i32 = arith.constant 0 : i32
    %c0_i32_0 = arith.constant 0 : i32
    return %c0_i32, %arg0 : i32, i32
  }
  func.func @transform_4(%arg0: i32) -> (i32, i32) {
    %c0_i32 = arith.constant 0 : i32
    %c0_i32_0 = arith.constant 0 : i32
    return %c0_i32, %arg0 : i32, i32
  }
  func.func @transform_5(%arg0: i32) -> (i32, i32) {
    %c0_i32 = arith.constant 0 : i32
    %c0_i32_0 = arith.constant 0 : i32
    return %c0_i32, %arg0 : i32, i32
  }
  func.func @transform_6(%arg0: i32) -> (i32, i32) {
    %c0_i32 = arith.constant 0 : i32
    %c0_i32_0 = arith.constant 0 : i32
    return %c0_i32, %arg0 : i32, i32
  }
}

</mosaic_0001>

<bundles_post_ra>
// kernel: gaussian_forward.1
= control target key start
LH: loop header
LB: loop body
LE: loop exit
PB: predicated region body
PF: predicated region fallthrough
CT: control target
= control target key end

     0   :  { %s2875_s0 = inlined_call_operand.vmem [shape: f32[300,32], index: 0, kind: input, shape index: {}]   ;;  %s2876_s1 = inlined_call_operand.vmem [shape: f32[32,32], index: 1, kind: input, shape index: {}]   ;;  %s2877_s2 = inlined_call_operand.vmem [shape: f32[32,1], index: 2, kind: input, shape index: {}]   ;;  %s2878_s3 = inlined_call_operand.vmem [shape: f32[16,300], index: 3, kind: input, shape index: {}]   ;;  %s2879_s4 = inlined_call_operand.hbm [shape: f32[16,300], index: 4, kind: output, shape index: {0}]   ;;  %s2880_s5 = inlined_call_operand.hbm [shape: f32[16,300], index: 5, kind: output, shape index: {1}]   ;;  %s2881_s6 = inlined_call_operand.hbm [shape: f32[16,300], index: 6, kind: output, shape index: {2}]  }
   0x1   :  { %2886 = sst [smem:[#allocation13_spill]] %s2878_s3 }
   0x2   :  { %12 = vsyncpa [#allocation4], 0 }
   0x3   :  { %14 = vsyncpa [#allocation4 + $0x1], 0 }
   0x4   :  { %15 = vsyncpa [#allocation6], 0 }
   0x5   :  { %17 = vsyncpa [#allocation6 + $0x1], 0  ;;  %s2146_s21 = smov 0   ;;  %s2148_s22 = smov 0  }
   0x6   :  { %s2150_s23 = smov 0   ;;  %s2152_s24 = smov 0  }
   0x7 LB: > { %2887 = sst [smem:[#allocation10_spill]] %s2029_s23  ;;  %s2167_s25 = sadd.s32 4294967295, %s2033_s24   ;;  %s2033_s24 = sphi %s2152_s24, %s2906_s24   ;;  %s2029_s23 = sphi %s2150_s23, %s2908_s23   ;;  %s2025_s22 = sphi %s2148_s22, %s2910_s22   ;;  %s2021_s21 = sphi %s2146_s21, %s2909_s21  }
   0x8   : > { %s2882_s26 = sadd.s32 4294967294, %s2033_s24   ;;  %s2171_s27 = sadd.s32 1, %s2033_s24  }
   0x9   : > { %2888 = sst [smem:[#allocation11_spill]] %s2171_s27  ;;  %s98_s28 = sadd.s32 1, %s2029_s23 }
   0xa   : > { %s95_s29 = ssub.s32 %s2033_s24, %s2171_s27  ;;  %p105_p0 = scmp.ne.s32.totalorder %s2029_s23, %s2025_s22 }
   0xb   : > { %p96_p1 = scmp.eq.s32.totalorder %s95_s29, 0  ;;  %p106_p2 = scmp.eq.s32.totalorder %s2033_s24, 0 }
   0xc   : > { %p135_p3 = scmp.eq.s32.totalorder %s2167_s25, 1  ;;  %p140_p4 = scmp.ne.s32.totalorder %s2025_s22, %s2021_s21 }
   0xd   : > { %s2183_s30 = scalar_select %p96_p1, %s2029_s23, %s98_s28  }
   0xe   : > { %p107_p5 = por %p106_p2, %p105_p0  ;;  %p2185_p6 = por %p135_p3, %p105_p0 }
   0xf   : > { %2889 = sst [smem:[#allocation12_spill]] %s2183_s30  ;;  %p141_p7 = scmp.eq.s32.totalorder %s2882_s26, 1 }
  0x10   : > { %p1423_p9 = scmp.ge.s32.totalorder %s2033_s24, 2 }
  0x11   : > { %p2191_p8 = por %p141_p7, %p140_p4 }
  0x12   : > { %215 = sbr.rel (%p1423_p9) target bundleno = 169 (0xa9), region = 24 }
  0x19   : > { %235 = sbr.rel (!%p107_p5) target bundleno = 169 (0xa9), region = 32  ;;  %s237_s9 = sand.u32 (%p107_p5), 1, %s2029_s23  }
  0x1a   : > { %s1425_s10 = sshll.u32 (%p107_p5), %s2033_s24, 1  ;;  %s1424_s11 = sshll.u32 (%p107_p5), %s237_s9, 5 }
  0x1b   : > { %s241_s12 = ssub.s32 (%p107_p5), 3, %s1425_s10  ;;  %s1520_s13 = sshll.u32 (%p107_p5), %s2033_s24, 4 }
  0x1c   : > { %p242_p10 = scmp.lt.s32.totalorder (%p107_p5), %s241_s12, 2  ;;  %s2892_s3 = sld [smem:[#allocation13_spill]] (%p107_p5) }
  0x1d   : > { %s2208_s19 = scalar_lea.vmem (%p107_p5), [#allocation2], %s1424_s11  }
  0x20   : > { %s2912_s12 = smov (!%p242_p10, %s241_s12), 2 }
  0x21   : > { %s1426_s17 = sshll.u32 %s2912_s12, 8  ;;  %s2206_s18 = sshll.u32 %s2912_s12, 3 }
  0x22   : > { %s2204_s16 = scalar_lea.vmem %s2892_s3, %s1520_s13   ;;  %p1430_p11 = scmp.eq.s32.totalorder %s1426_s17, 0 }
  0x23   : > { %p252_p12 = scmp.lt.u32.totalorder (!%p1430_p11), %s2206_s18, 8 }
  0x24   : > { %251 = sbr.rel (%p1430_p11) target bundleno = 169 (0xa9), region = 36 }
  0x2b   : > { %255 = sbr.rel (%p252_p12) target bundleno = 160 (0xa0), region = 40  ;;  %s2212_s20 = sand.u32 (!%p252_p12), 7, %s2206_s18  }
  0x2c   : > { %p273_p13 = scmp.eq.s32.totalorder (!%p252_p12), %s2212_s20, 0  ;;  %p1431_p0 = scmp.ne.s32.totalorder (!%p252_p12), %s2212_s20, 0 }
  0x32   : > { %276 = sbr.rel (%p1431_p0) target bundleno = 103 (0x67), region = 55  ;;  %s277_s28 = sshrl.u32 (!%p1431_p0), %s2206_s18, 3 }
  0x33   : > { %s2219_s29 = sshrl.u32 (!%p1431_p0), %s277_s28, 5 }
  0x34   : > { %p1432_p1 = scmp.le.s32.totalorder (!%p1431_p0), %s2219_s29, 0 }
  0x39   : > { %1325 = sbr.rel (%p1432_p1) target bundleno = 83 (0x53), region = 189  ;;  %s2893_s9 = smov (!%p1432_p1), %s2208_s19 }
  0x3a   : > { %s2894_s10 = smov (!%p1432_p1), %s2204_s16  ;;  %s2228_s11 = smov (!%p1432_p1), 0  }
  0x3b   : > { %s2230_s12 = smov (!%p1432_p1), 0  }
  0x40 LB: >> { %v296_v0 = vld [vmem:[%s2041_s10 + $0x18] sm:$0xff]  ;;  %v298_v1 = vld [vmem:[%s2041_s10 + $0x20] sm:$0xff]  ;;  %v300_v2 = vld [vmem:[%s2041_s10 + $0x28] sm:$0xff]  ;;  %s418_s13 = sadd.s32 1, %s2045_s11  ;;  %s284_s12 = sadd.s32 1, %s2049_s12   ;;  %s2049_s12 = sphi %s2230_s12, %s284_s12   ;;  %s2045_s11 = sphi %s2228_s11, %s2897_s11   ;;  %s2041_s10 = sphi %s2894_s10, %s2896_s10   ;;  %s2037_s9 = sphi %s2893_s9, %s2895_s9  }
  0x41   : >> { %v302_v3 = vld [vmem:[%s2041_s10 + $0x30] sm:$0xff]  ;;  %v304_v4 = vld [vmem:[%s2041_s10 + $0x38] sm:$0xff]  ;;  %v306_v5 = vld [vmem:[%s2041_s10 + $0x40] sm:$0xff]  ;;  %355 = vst [vmem:[%s2037_s9 + $0x10] sm:$0xff] %v296_v0  ;;  %p419_p2 = scmp.ge.s32.totalorder %s418_s13, %s2219_s29  ;;  %p283_p3 = scmp.ge.s32.totalorder %s284_s12, %s2219_s29 }
  0x42   : >> { %357 = vst [vmem:[%s2037_s9 + $0x18] sm:$0xff] %v298_v1  ;;  %359 = vst [vmem:[%s2037_s9 + $0x20] sm:$0xff] %v300_v2  ;;  %v308_v6 = vld [vmem:[%s2041_s10 + $0x48] sm:$0xff]  ;;  %v310_v7 = vld [vmem:[%s2041_s10 + $0x50] sm:$0xff] }
  0x43   : >> { %v312_v8 = vld [vmem:[%s2041_s10 + $0x58] sm:$0xff]  ;;  %361 = vst [vmem:[%s2037_s9 + $0x28] sm:$0xff] %v302_v3  ;;  %363 = vst [vmem:[%s2037_s9 + $0x30] sm:$0xff] %v304_v4  ;;  %v314_v9 = vld [vmem:[%s2041_s10 + $0x60] sm:$0xff]  ;;  %s2914_s13 = smov (%p419_p2, %s418_s13), 0 }
  0x44   : >> { %365 = vst [vmem:[%s2037_s9 + $0x38] sm:$0xff] %v306_v5  ;;  %v316_v10 = vld [vmem:[%s2041_s10 + $0x68] sm:$0xff]  ;;  %v318_v11 = vld [vmem:[%s2041_s10 + $0x70] sm:$0xff]  ;;  %367 = vst [vmem:[%s2037_s9 + $0x40] sm:$0xff] %v308_v6  ;;  %s1433_s14 = sshll.u32 %s2914_s13, 8  ;;  %s2897_s11 = smov %s2914_s13 }
  0x45   : >> { %369 = vst [vmem:[%s2037_s9 + $0x48] sm:$0xff] %v310_v7  ;;  %371 = vst [vmem:[%s2037_s9 + $0x50] sm:$0xff] %v312_v8  ;;  %v320_v12 = vld [vmem:[%s2041_s10 + $0x78] sm:$0xff]  ;;  %v322_v13 = vld [vmem:[%s2041_s10 + $0x80] sm:$0xff]  ;;  %s423_s15 = scalar_lea.vmem %s2204_s16, %s1433_s14   ;;  %s424_s17 = scalar_lea.vmem %s2208_s19, %s1433_s14 [#allocation2]  }
  0x46   : >> { %v324_v14 = vld [vmem:[%s2041_s10 + $0x88] sm:$0xff]  ;;  %373 = vst [vmem:[%s2037_s9 + $0x58] sm:$0xff] %v314_v9  ;;  %375 = vst [vmem:[%s2037_s9 + $0x60] sm:$0xff] %v316_v10  ;;  %v326_v15 = vld [vmem:[%s2041_s10 + $0x90] sm:$0xff] }
  0x47   : >> { %377 = vst [vmem:[%s2037_s9 + $0x68] sm:$0xff] %v318_v11  ;;  %v328_v16 = vld [vmem:[%s2041_s10 + $0x98] sm:$0xff]  ;;  %v330_v17 = vld [vmem:[%s2041_s10 + $0xa0] sm:$0xff]  ;;  %379 = vst [vmem:[%s2037_s9 + $0x70] sm:$0xff] %v320_v12 }
  0x48   : >> { %381 = vst [vmem:[%s2037_s9 + $0x78] sm:$0xff] %v322_v13  ;;  %383 = vst [vmem:[%s2037_s9 + $0x80] sm:$0xff] %v324_v14  ;;  %v332_v18 = vld [vmem:[%s2041_s10 + $0xa8] sm:$0xff]  ;;  %v334_v19 = vld [vmem:[%s2041_s10 + $0xb0] sm:$0xff] }
  0x49   : >> { %v336_v20 = vld [vmem:[%s2041_s10 + $0xb8] sm:$0xff]  ;;  %385 = vst [vmem:[%s2037_s9 + $0x88] sm:$0xff] %v326_v15  ;;  %387 = vst [vmem:[%s2037_s9 + $0x90] sm:$0xff] %v328_v16  ;;  %v338_v21 = vld [vmem:[%s2041_s10 + $0xc0] sm:$0xff] }
  0x4a   : >> { %389 = vst [vmem:[%s2037_s9 + $0x98] sm:$0xff] %v330_v17  ;;  %v340_v22 = vld [vmem:[%s2041_s10 + $0xc8] sm:$0xff]  ;;  %v342_v23 = vld [vmem:[%s2041_s10 + $0xd0] sm:$0xff]  ;;  %391 = vst [vmem:[%s2037_s9 + $0xa0] sm:$0xff] %v332_v18 }
  0x4b   : >> { %393 = vst [vmem:[%s2037_s9 + $0xa8] sm:$0xff] %v334_v19  ;;  %395 = vst [vmem:[%s2037_s9 + $0xb0] sm:$0xff] %v336_v20  ;;  %v344_v24 = vld [vmem:[%s2041_s10 + $0xd8] sm:$0xff]  ;;  %v346_v25 = vld [vmem:[%s2041_s10 + $0xe0] sm:$0xff] }
  0x4c   : >> { %v348_v26 = vld [vmem:[%s2041_s10 + $0xe8] sm:$0xff]  ;;  %397 = vst [vmem:[%s2037_s9 + $0xb8] sm:$0xff] %v338_v21  ;;  %399 = vst [vmem:[%s2037_s9 + $0xc0] sm:$0xff] %v340_v22  ;;  %v350_v27 = vld [vmem:[%s2041_s10 + $0xf0] sm:$0xff]  ;;  %286 = sbr.rel (!%p283_p3) target bundleno = 64 (0x40), region = 195 }
  0x4d   : >> { %401 = vst [vmem:[%s2037_s9 + $0xc8] sm:$0xff] %v342_v23  ;;  %v352_v28 = vld [vmem:[%s2041_s10 + $0xf8] sm:$0xff]  ;;  %v290_v29 = vld [vmem:[%s2041_s10] sm:$0xff]  ;;  %403 = vst [vmem:[%s2037_s9 + $0xd0] sm:$0xff] %v344_v24 }
  0x4e   : >> { %405 = vst [vmem:[%s2037_s9 + $0xd8] sm:$0xff] %v346_v25  ;;  %407 = vst [vmem:[%s2037_s9 + $0xe0] sm:$0xff] %v348_v26  ;;  %v292_v30 = vld [vmem:[%s2041_s10 + $0x8] sm:$0xff]  ;;  %v412_v31 = vld [vmem:[%s2041_s10 + $0x100] sm:$0xff] }
  0x4f   : >> { %291 = vst [vmem:[%s2037_s9] sm:$0xff] %v290_v29  ;;  %409 = vst [vmem:[%s2037_s9 + $0xe8] sm:$0xff] %v350_v27  ;;  %v414_v32 = vld [vmem:[%s2041_s10 + $0x108] sm:$0xff]  ;;  %v416_v33 = vld [vmem:[%s2041_s10 + $0x110] sm:$0xff]  ;;  %s2896_s10 = smov %s423_s15 }
  0x50   : >> { %411 = vst [vmem:[%s2037_s9 + $0xf0] sm:$0xff] %v352_v28  ;;  %293 = vst [vmem:[%s2037_s9 + $0x8] sm:$0xff] %v292_v30 }
  0x51   : >> { %413 = vst [vmem:[%s2037_s9 + $0xf8] sm:$0xff] %v412_v31  ;;  %415 = vst [vmem:[%s2037_s9 + $0x100] sm:$0xff] %v414_v32 }
  0x52   : >> { %417 = vst [vmem:[%s2037_s9 + $0x108] sm:$0xff] %v416_v33  ;;  %s2895_s9 = smov %s424_s17 }
  0x53 PF: > { %s2332_s14 = sand.u32 31, %s277_s28   ;;  %s1521_s26 = sshll.u32 %s2219_s29, 12 }
  0x54   : > { %s429_s3 = sshra.s32 %s1521_s26, 4  ;;  %p1438_p4 = scmp.le.s32.totalorder %s2332_s14, 0 }
  0x55   : > { %s2336_s30 = scalar_lea.vmem %s2204_s16, %s429_s3   ;;  %s433_s17 = scalar_lea.vmem %s2208_s19, %s429_s3 [#allocation2]  }
  0x56   : > { %1339 = sbr.rel (%p1438_p4) target bundleno = 103 (0x67), region = 200  ;;  %s2051_s13 = smov (!%p1438_p4), %s433_s17  }
  0x57   : > { %s2055_s12 = smov (!%p1438_p4), %s2336_s30   ;;  %s2059_s15 = smov (!%p1438_p4), 0  }
  0x58   : > { %s2063_s9 = smov (!%p1438_p4), 0  }
  0x5d LB: >> { %v445_v34 = vld [vmem:[%s2057_s12] sm:$0xff]  ;;  %v447_v35 = vld [vmem:[%s2057_s12 + $0x18] sm:$0xff]  ;;  %s449_s26 = sadd.s32 1, %s2061_s15  ;;  %s439_s9 = sadd.s32 1, %s2065_s9   ;;  %s2065_s9 = sphi %s2063_s9, %s439_s9   ;;  %s2061_s15 = sphi %s2059_s15, %s2060_s15   ;;  %s2057_s12 = sphi %s2055_s12, %s454_s12   ;;  %s2053_s13 = sphi %s2051_s13, %s455_s13  }
  0x5e   : >> { %446 = vst [vmem:[%s2053_s13] sm:$0xff] %v445_v34  ;;  %448 = vst [vmem:[%s2053_s13 + $0x10] sm:$0xff] %v447_v35  ;;  %p450_p5 = scmp.ge.s32.totalorder %s449_s26, %s2332_s14  ;;  %p438_p7 = scmp.ge.s32.totalorder %s439_s9, %s2332_s14 }
  0x60   : >> { %s2916_s26 = smov (%p450_p5, %s449_s26), 0  ;;  %441 = sbr.rel (!%p438_p7) target bundleno = 93 (0x5d), region = 206 }
  0x61   : >> { %s1439_s3 = sshll.u32 %s2916_s26, 3  ;;  %s2060_s15 = smov %s2916_s26  }
  0x62   : >> { %s454_s12 = scalar_lea.vmem %s2336_s30, %s1439_s3   ;;  %s455_s13 = scalar_lea.vmem %s433_s17, %s1439_s3 [#allocation2]  }
  0x67 PF: > { %458 = sbr.rel (%p273_p13) target bundleno = 160 (0xa0), region = 73  ;;  %s460_s28 = ssub.s32 (!%p273_p13), %s2206_s18, %s2212_s20 }
  0x68   : > { %s464_s29 = sshrl.u32 (!%p273_p13), %s2206_s18, 3  ;;  %s2350_s10 = scalar_lea.vmem (!%p273_p13), %s2204_s16, %s460_s28 }
  0x69   : > { %s2353_s11 = scalar_lea.vmem (!%p273_p13), %s2208_s19, %s460_s28 [#allocation2]  ;;  %s2357_s13 = sshrl.u32 (!%p273_p13), %s464_s29, 5 }
  0x6a   : > { %p1441_p10 = scmp.le.s32.totalorder (!%p273_p13), %s2357_s13, 0 }
  0x6e   : > { %1353 = sbr.rel (%p1441_p10) target bundleno = 136 (0x88), region = 211  ;;  %s2898_s30 = smov (!%p1441_p10), %s2208_s19 }
  0x6f   : > { %s2899_s14 = smov (!%p1441_p10), %s2204_s16  ;;  %s2366_s17 = smov (!%p1441_p10), 0  }
  0x70   : > { %s2368_s12 = smov (!%p1441_p10), 0  }
  0x75 LB: >> { %v483_v36 = vld [vmem:[%s2073_s14 + $0x18] sm:$0xff]  ;;  %v485_v37 = vld [vmem:[%s2073_s14 + $0x20] sm:$0xff]  ;;  %v487_v38 = vld [vmem:[%s2073_s14 + $0x28] sm:$0xff]  ;;  %s605_s15 = sadd.s32 1, %s2077_s17  ;;  %s471_s12 = sadd.s32 1, %s2081_s12   ;;  %s2081_s12 = sphi %s2368_s12, %s471_s12   ;;  %s2077_s17 = sphi %s2366_s17, %s2902_s17   ;;  %s2073_s14 = sphi %s2899_s14, %s2901_s14   ;;  %s2069_s30 = sphi %s2898_s30, %s2900_s30  }
  0x76   : >> { %v489_v39 = vld [vmem:[%s2073_s14 + $0x30] sm:$0xff]  ;;  %v491_v40 = vld [vmem:[%s2073_s14 + $0x38] sm:$0xff]  ;;  %v493_v41 = vld [vmem:[%s2073_s14 + $0x40] sm:$0xff]  ;;  %542 = vst [vmem:[%s2069_s30 + $0x10] sm:$0xff] %v483_v36  ;;  %p606_p11 = scmp.ge.s32.totalorder %s605_s15, %s2357_s13  ;;  %p470_p12 = scmp.ge.s32.totalorder %s471_s12, %s2357_s13 }
  0x77   : >> { %544 = vst [vmem:[%s2069_s30 + $0x18] sm:$0xff] %v485_v37  ;;  %546 = vst [vmem:[%s2069_s30 + $0x20] sm:$0xff] %v487_v38  ;;  %v495_v42 = vld [vmem:[%s2073_s14 + $0x48] sm:$0xff]  ;;  %v497_v43 = vld [vmem:[%s2073_s14 + $0x50] sm:$0xff] }
  0x78   : >> { %v499_v44 = vld [vmem:[%s2073_s14 + $0x58] sm:$0xff]  ;;  %548 = vst [vmem:[%s2069_s30 + $0x28] sm:$0xff] %v489_v39  ;;  %550 = vst [vmem:[%s2069_s30 + $0x30] sm:$0xff] %v491_v40  ;;  %v501_v45 = vld [vmem:[%s2073_s14 + $0x60] sm:$0xff]  ;;  %s2918_s15 = smov (%p606_p11, %s605_s15), 0 }
  0x79   : >> { %552 = vst [vmem:[%s2069_s30 + $0x38] sm:$0xff] %v493_v41  ;;  %v503_v46 = vld [vmem:[%s2073_s14 + $0x68] sm:$0xff]  ;;  %v505_v47 = vld [vmem:[%s2073_s14 + $0x70] sm:$0xff]  ;;  %554 = vst [vmem:[%s2069_s30 + $0x40] sm:$0xff] %v495_v42  ;;  %s1442_s9 = sshll.u32 %s2918_s15, 8  ;;  %s2902_s17 = smov %s2918_s15 }
  0x7a   : >> { %556 = vst [vmem:[%s2069_s30 + $0x48] sm:$0xff] %v497_v43  ;;  %558 = vst [vmem:[%s2069_s30 + $0x50] sm:$0xff] %v499_v44  ;;  %v507_v48 = vld [vmem:[%s2073_s14 + $0x78] sm:$0xff]  ;;  %v509_v49 = vld [vmem:[%s2073_s14 + $0x80] sm:$0xff]  ;;  %s610_s26 = scalar_lea.vmem %s2204_s16, %s1442_s9   ;;  %s611_s3 = scalar_lea.vmem %s2208_s19, %s1442_s9 [#allocation2]  }
  0x7b   : >> { %v511_v50 = vld [vmem:[%s2073_s14 + $0x88] sm:$0xff]  ;;  %560 = vst [vmem:[%s2069_s30 + $0x58] sm:$0xff] %v501_v45  ;;  %562 = vst [vmem:[%s2069_s30 + $0x60] sm:$0xff] %v503_v46  ;;  %v513_v51 = vld [vmem:[%s2073_s14 + $0x90] sm:$0xff] }
  0x7c   : >> { %564 = vst [vmem:[%s2069_s30 + $0x68] sm:$0xff] %v505_v47  ;;  %v515_v52 = vld [vmem:[%s2073_s14 + $0x98] sm:$0xff]  ;;  %v517_v53 = vld [vmem:[%s2073_s14 + $0xa0] sm:$0xff]  ;;  %566 = vst [vmem:[%s2069_s30 + $0x70] sm:$0xff] %v507_v48 }
  0x7d   : >> { %568 = vst [vmem:[%s2069_s30 + $0x78] sm:$0xff] %v509_v49  ;;  %570 = vst [vmem:[%s2069_s30 + $0x80] sm:$0xff] %v511_v50  ;;  %v519_v54 = vld [vmem:[%s2073_s14 + $0xa8] sm:$0xff]  ;;  %v521_v55 = vld [vmem:[%s2073_s14 + $0xb0] sm:$0xff] }
  0x7e   : >> { %v523_v56 = vld [vmem:[%s2073_s14 + $0xb8] sm:$0xff]  ;;  %572 = vst [vmem:[%s2069_s30 + $0x88] sm:$0xff] %v513_v51  ;;  %574 = vst [vmem:[%s2069_s30 + $0x90] sm:$0xff] %v515_v52  ;;  %v525_v57 = vld [vmem:[%s2073_s14 + $0xc0] sm:$0xff] }
  0x7f   : >> { %576 = vst [vmem:[%s2069_s30 + $0x98] sm:$0xff] %v517_v53  ;;  %v527_v58 = vld [vmem:[%s2073_s14 + $0xc8] sm:$0xff]  ;;  %v529_v59 = vld [vmem:[%s2073_s14 + $0xd0] sm:$0xff]  ;;  %578 = vst [vmem:[%s2069_s30 + $0xa0] sm:$0xff] %v519_v54 }
  0x80   : >> { %580 = vst [vmem:[%s2069_s30 + $0xa8] sm:$0xff] %v521_v55  ;;  %582 = vst [vmem:[%s2069_s30 + $0xb0] sm:$0xff] %v523_v56  ;;  %v531_v60 = vld [vmem:[%s2073_s14 + $0xd8] sm:$0xff]  ;;  %v533_v61 = vld [vmem:[%s2073_s14 + $0xe0] sm:$0xff] }
  0x81   : >> { %v535_v62 = vld [vmem:[%s2073_s14 + $0xe8] sm:$0xff]  ;;  %584 = vst [vmem:[%s2069_s30 + $0xb8] sm:$0xff] %v525_v57  ;;  %586 = vst [vmem:[%s2069_s30 + $0xc0] sm:$0xff] %v527_v58  ;;  %v537_v63 = vld [vmem:[%s2073_s14 + $0xf0] sm:$0xff]  ;;  %473 = sbr.rel (!%p470_p12) target bundleno = 117 (0x75), region = 217 }
  0x82   : >> { %588 = vst [vmem:[%s2069_s30 + $0xc8] sm:$0xff] %v529_v59  ;;  %v539_v0 = vld [vmem:[%s2073_s14 + $0xf8] sm:$0xff]  ;;  %v477_v1 = vld [vmem:[%s2073_s14] sm:$0xff]  ;;  %590 = vst [vmem:[%s2069_s30 + $0xd0] sm:$0xff] %v531_v60 }
  0x83   : >> { %592 = vst [vmem:[%s2069_s30 + $0xd8] sm:$0xff] %v533_v61  ;;  %594 = vst [vmem:[%s2069_s30 + $0xe0] sm:$0xff] %v535_v62  ;;  %v479_v2 = vld [vmem:[%s2073_s14 + $0x8] sm:$0xff]  ;;  %v599_v3 = vld [vmem:[%s2073_s14 + $0x100] sm:$0xff] }
  0x84   : >> { %478 = vst [vmem:[%s2069_s30] sm:$0xff] %v477_v1  ;;  %596 = vst [vmem:[%s2069_s30 + $0xe8] sm:$0xff] %v537_v63  ;;  %v601_v4 = vld [vmem:[%s2073_s14 + $0x108] sm:$0xff]  ;;  %v603_v5 = vld [vmem:[%s2073_s14 + $0x110] sm:$0xff]  ;;  %s2901_s14 = smov %s610_s26 }
  0x85   : >> { %598 = vst [vmem:[%s2069_s30 + $0xf0] sm:$0xff] %v539_v0  ;;  %480 = vst [vmem:[%s2069_s30 + $0x8] sm:$0xff] %v479_v2 }
  0x86   : >> { %600 = vst [vmem:[%s2069_s30 + $0xf8] sm:$0xff] %v599_v3  ;;  %602 = vst [vmem:[%s2069_s30 + $0x100] sm:$0xff] %v601_v4 }
  0x87   : >> { %604 = vst [vmem:[%s2069_s30 + $0x108] sm:$0xff] %v603_v5  ;;  %s2900_s30 = smov %s611_s3 }
  0x88 PF: > { %s2470_s28 = sand.u32 31, %s464_s29   ;;  %s1523_s9 = sshll.u32 %s2357_s13, 12 }
  0x89   : > { %s616_s23 = sshra.s32 %s1523_s9, 4  ;;  %p1447_p13 = scmp.le.s32.totalorder %s2470_s28, 0 }
  0x8a   : > { %s2474_s27 = scalar_lea.vmem %s2204_s16, %s616_s23   ;;  %s620_s3 = scalar_lea.vmem %s2208_s19, %s616_s23 [#allocation2]  }
  0x8b   : > { %1367 = sbr.rel (%p1447_p13) target bundleno = 156 (0x9c), region = 222  ;;  %s2083_s15 = smov (!%p1447_p13), %s620_s3  }
  0x8c   : > { %s2087_s12 = smov (!%p1447_p13), %s2474_s27   ;;  %s2091_s26 = smov (!%p1447_p13), 0  }
  0x8d   : > { %s2095_s30 = smov (!%p1447_p13), 0  }
  0x92 LB: >> { %v632_v6 = vld [vmem:[%s2089_s12] sm:$0xff]  ;;  %v634_v7 = vld [vmem:[%s2089_s12 + $0x18] sm:$0xff]  ;;  %s636_s29 = sadd.s32 1, %s2093_s26  ;;  %s626_s30 = sadd.s32 1, %s2097_s30   ;;  %s2097_s30 = sphi %s2095_s30, %s626_s30   ;;  %s2093_s26 = sphi %s2091_s26, %s2092_s26   ;;  %s2089_s12 = sphi %s2087_s12, %s641_s12   ;;  %s2085_s15 = sphi %s2083_s15, %s642_s15  }
  0x93   : >> { %633 = vst [vmem:[%s2085_s15] sm:$0xff] %v632_v6  ;;  %635 = vst [vmem:[%s2085_s15 + $0x10] sm:$0xff] %v634_v7  ;;  %p637_p0 = scmp.ge.s32.totalorder %s636_s29, %s2470_s28  ;;  %p625_p1 = scmp.ge.s32.totalorder %s626_s30, %s2470_s28 }
  0x95   : >> { %s2920_s29 = smov (%p637_p0, %s636_s29), 0  ;;  %628 = sbr.rel (!%p625_p1) target bundleno = 146 (0x92), region = 228 }
  0x96   : >> { %s1448_s23 = sshll.u32 %s2920_s29, 3  ;;  %s2092_s26 = smov %s2920_s29  }
  0x97   : >> { %s641_s12 = scalar_lea.vmem %s2474_s27, %s1448_s23   ;;  %s642_s15 = scalar_lea.vmem %s620_s3, %s1448_s23 [#allocation2]  }
  0x9c PF: > { %s2099_s13 = smov 0  }
  0x9d   : > { %s643_s14 = sshllo.u32 %s2099_s13, %s2212_s20 }
  0x9e   : > { %v652_v8 = vld [vmem:[%s2350_s10] sm:%s643_s14]  ;;  %v654_v9 = vld [vmem:[%s2350_s10 + $0x18] sm:%s643_s14] }
  0x9f   : > { %653 = vst [vmem:[%s2353_s11] sm:%s643_s14] %v652_v8  ;;  %655 = vst [vmem:[%s2353_s11 + $0x10] sm:%s643_s14] %v654_v9 }
  0xa0 PF: > { %p1450_p2 = scmp.ge.u32.totalorder %s2206_s18, 8 }
  0xa1   : > { %s2100_s17 = smov (!%p1450_p2), 0  }
  0xa2   : > { %258 = sbr.rel (%p1450_p2) target bundleno = 169 (0xa9), region = 44  ;;  %s259_s27 = sshllo.u32 (!%p1450_p2), %s2100_s17, %s2206_s18 }
  0xa3   : > { %v268_v10 = vld [vmem:[%s2204_s16] sm:%s259_s27] (!%p1450_p2)  ;;  %v270_v11 = vld [vmem:[%s2204_s16 + $0x18] sm:%s259_s27] (!%p1450_p2) }
  0xa4   : > { %269 = vst [vmem:[%s2208_s19] sm:%s259_s27] (!%p1450_p2), %v268_v10  ;;  %271 = vst [vmem:[%s2208_s19 + $0x10] sm:%s259_s27] (!%p1450_p2), %v270_v11 }
  0xa9 PF: > { %p1451_p3 = scmp.ge.s32.totalorder %s2033_s24, 1  ;;  %p658_p4 = scmp.lt.s32.totalorder %s2033_s24, 3 }
  0xab   : > { %p659_p5 = pnand %p1451_p3, %p658_p4 }
  0xac   : > { %s1456_s20 = sshll.u32 (!%p659_p5), %s2167_s25, 5  ;;  %vm807_vm0 = vcmask (!%p659_p5), 261120   ;;  %v2499_v12 = vld [vmem:[%s2876_s1 + $0x10] sm:$0xff] (!%p659_p5)  ;;  %v2504_v13 = vld [vmem:[%s2876_s1] sm:$0xff] (!%p659_p5)  ;;  %v2101_v15 = vmov (!%p659_p5), 0   ;;  %v786_v17 = vld [vmem:[%s2877_s2 + $0x18] sm:$0xff] (!%p659_p5) }
  0xad   : > { %662 = sbr.rel (%p659_p5) target bundleno = 627 (0x273), region = 98  ;;  %p718_p7 = scmp.lt.s32.totalorder (!%p659_p5), %s1456_s20, 37  ;;  %1570 = vmatprep.mubr.msk.f32.mxu1 (!%p659_p5), %vm807_vm0, %v2499_v12  ;;  %1566 = vmatprep.mubr.msk.f32.mxu0 (!%p659_p5), %vm807_vm0, %v2504_v13  ;;  %v785_v14 = vld [vmem:[%s2877_s2 + $0x10] sm:$0xff] (!%p659_p5)  ;;  %v783_v16 = vld [vmem:[%s2877_s2] sm:$0xff] (!%p659_p5)  ;;  %v784_v18 = vld [vmem:[%s2877_s2 + $0x8] sm:$0xff] (!%p659_p5) }
  0xae   : > { %1821 = vset.pattern.permute.xlu0 (!%p659_p5), %v2101_v15  ;;  %1822 = vset.pattern.permute.xlu1 (!%p659_p5), %v2101_v15  ;;  %vm2529_vm1 = vmpackc.low (!%p659_p5), %vm807_vm0, %vm807_vm0  ;;  %v750_v4 = vld [vmem:[%s2876_s1 + $0x18] sm:$0xff] (!%p659_p5)  ;;  %v748_v5 = vld [vmem:[%s2876_s1 + $0x8] sm:$0xff] (!%p659_p5)  ;;  %s665_s11 = sand.u32 (!%p659_p5), 1, %s2025_s22   ;;  %s1126_s16 = sand.u32 (!%p659_p5), 1, %s2167_s25  }
  0xaf   : > { %799 = vperm.xlu0 (!%p659_p5), %1821, %v785_v14   ;;  %789 = vperm.xlu1 (!%p659_p5), %1822, %v783_v16   ;;  %s2647_s18 = sshll.u32 (!%p659_p5), %s665_s11, 5  ;;  %s2705_s15 = scalar_lea.sflag (!%p659_p5), [#allocation4], %s665_s11 }
  0xb0   : > { %s2659_s19 = scalar_lea.vmem (!%p659_p5), [#allocation3], %s2647_s18  ;;  %s2684_s28 = scalar_lea.vmem (!%p659_p5), [#allocation5], %s2647_s18 }
  0xb1   : > { %s667_s9 = scalar_lea.vmem (!%p659_p5), [#allocation2], %s2647_s18  ;;  %s2695_s3 = scalar_lea.vmem (!%p659_p5), [#allocation7], %s2647_s18 }
  0xb2   : > { %s2709_s12 = scalar_lea.sflag (!%p659_p5), [#allocation6], %s1126_s16 }
  0xb3   : > { %804 = vperm.xlu0 (!%p659_p5), %1821, %v786_v17   ;;  %794 = vperm.xlu1 (!%p659_p5), %1822, %v784_v18  }
  0xb4   : > { %s2922_s20 = smov (!%p718_p7, %s1456_s20), 37  ;;  %s1497_s26 = sshll.u32 (%p2185_p6), %s2167_s25, 1 }
  0xb5   : > { %s1457_s29 = sshll.u32 %s2922_s20, 3  ;;  %s1140_s30 = ssub.s32 (%p2185_p6), 3, %s1497_s26 }
  0xb6   : > { %s2525_s14 = scalar_lea.vmem %s2875_s0, %s1457_s29  ;;  %p1141_p10 = scmp.lt.s32.totalorder (%p2185_p6), %s1140_s30, 2 }
  0xb7   : > { %v767_v20 = vld [vmem:[%s2525_s14 + $0x80] sm:$0xff]  ;;  %v768_v21 = vld [vmem:[%s2525_s14 + $0x88] sm:$0xff]  ;;  %v769_v25 = vld [vmem:[%s2525_s14 + $0x90] sm:$0xff] }
  0xb8   : > { %v751_v22 = vld [vmem:[%s2525_s14] sm:$0xff]  ;;  %v1574_v23 = vpack.c.bf16 %v768_v21, %v767_v20  ;;  %v752_v24 = vld [vmem:[%s2525_s14 + $0x8] sm:$0xff]  ;;  %v770_v26 = vld [vmem:[%s2525_s14 + $0x98] sm:$0xff] }
  0xb9   : > { %v1577_v27 = vpack.c.bf16 %v752_v24, %v751_v22  ;;  %v1580_v28 = vpack.c.bf16 %v770_v26, %v769_v25  ;;  %v753_v29 = vld [vmem:[%s2525_s14 + $0x10] sm:$0xff]  ;;  %v754_v30 = vld [vmem:[%s2525_s14 + $0x18] sm:$0xff]  ;;  %v771_v31 = vld [vmem:[%s2525_s14 + $0xa0] sm:$0xff] }
  0xba   : > { %1622 = vmatprep.subr.msk.bf16.mxu1 %vm2529_vm1, %v1574_v23  ;;  %1576 = vmatprep.subr.msk.bf16.mxu0 %vm2529_vm1, %v1574_v23  ;;  %v772_v32 = vld [vmem:[%s2525_s14 + $0xa8] sm:$0xff]  ;;  %v1583_v33 = vpack.c.bf16 %v754_v30, %v753_v29  ;;  %v755_v35 = vld [vmem:[%s2525_s14 + $0x20] sm:$0xff]  ;;  %v773_v37 = vld [vmem:[%s2525_s14 + $0xb0] sm:$0xff] }
  0xbb   : > { %1630 = vmatpush3.bf16.xpose.msk.msra.mxu1 %vm2529_vm1, %v1577_v27  ;;  %1579 = vmatpush3.bf16.xpose.msk.msra.mxu0 %vm2529_vm1, %v1577_v27  ;;  %v1586_v34 = vpack.c.bf16 %v772_v32, %v771_v31  ;;  %v756_v36 = vld [vmem:[%s2525_s14 + $0x28] sm:$0xff]  ;;  %v774_v38 = vld [vmem:[%s2525_s14 + $0xb8] sm:$0xff]  ;;  %v757_v41 = vld [vmem:[%s2525_s14 + $0x30] sm:$0xff] }
  0xbc   : > { %1623 = vmatprep.subr.msk.bf16.mxu1 %vm2529_vm1, %v1580_v28  ;;  %1582 = vmatprep.subr.msk.bf16.mxu0 %vm2529_vm1, %v1580_v28  ;;  %v1589_v39 = vpack.c.bf16 %v756_v36, %v755_v35  ;;  %v1592_v40 = vpack.c.bf16 %v774_v38, %v773_v37  ;;  %v758_v42 = vld [vmem:[%s2525_s14 + $0x38] sm:$0xff]  ;;  %v775_v43 = vld [vmem:[%s2525_s14 + $0xc0] sm:$0xff]  ;;  %v776_v44 = vld [vmem:[%s2525_s14 + $0xc8] sm:$0xff] }
  0xbd   : > { %v1595_v45 = vpack.c.bf16 %v758_v42, %v757_v41  ;;  %v1598_v46 = vpack.c.bf16 %v776_v44, %v775_v43  ;;  %v759_v47 = vld [vmem:[%s2525_s14 + $0x40] sm:$0xff]  ;;  %v760_v48 = vld [vmem:[%s2525_s14 + $0x48] sm:$0xff]  ;;  %v777_v49 = vld [vmem:[%s2525_s14 + $0xd0] sm:$0xff] }
  0xbe   : > { %v778_v50 = vld [vmem:[%s2525_s14 + $0xd8] sm:$0xff]  ;;  %v1601_v51 = vpack.c.bf16 %v760_v48, %v759_v47  ;;  %v761_v53 = vld [vmem:[%s2525_s14 + $0x50] sm:$0xff]  ;;  %v779_v55 = vld [vmem:[%s2525_s14 + $0xe0] sm:$0xff] }
  0xbf   : > { %v1604_v52 = vpack.c.bf16 %v778_v50, %v777_v49  ;;  %v762_v54 = vld [vmem:[%s2525_s14 + $0x58] sm:$0xff]  ;;  %v780_v56 = vld [vmem:[%s2525_s14 + $0xe8] sm:$0xff]  ;;  %v763_v59 = vld [vmem:[%s2525_s14 + $0x60] sm:$0xff] }
  0xc0   : > { %v1607_v57 = vpack.c.bf16 %v762_v54, %v761_v53  ;;  %v1610_v58 = vpack.c.bf16 %v780_v56, %v779_v55  ;;  %v764_v60 = vld [vmem:[%s2525_s14 + $0x68] sm:$0xff]  ;;  %v781_v61 = vld [vmem:[%s2525_s14 + $0xf0] sm:$0xff]  ;;  %v782_v62 = vld [vmem:[%s2525_s14 + $0xf8] sm:$0xff] }
  0xc1   : > { %v1613_v63 = vpack.c.bf16 %v764_v60, %v763_v59  ;;  %v1616_v0 = vpack.c.bf16 %v782_v62, %v781_v61  ;;  %v765_v1 = vld [vmem:[%s2525_s14 + $0x70] sm:$0xff]  ;;  %v766_v2 = vld [vmem:[%s2525_s14 + $0x78] sm:$0xff] }
  0xc2   : > { %v1619_v3 = vpack.c.bf16 %v766_v2, %v765_v1 }
  0xc3   : > { %1631 = vmatpush3.bf16.xpose.msk.msra.mxu1 %vm2529_vm1, %v1583_v33  ;;  %1585 = vmatpush3.bf16.xpose.msk.msra.mxu0 %vm2529_vm1, %v1583_v33 }
  0xc4   : > { %1624 = vmatprep.subr.msk.bf16.mxu1 %vm2529_vm1, %v1586_v34  ;;  %1588 = vmatprep.subr.msk.bf16.mxu0 %vm2529_vm1, %v1586_v34 }
  0xcb   : > { %1632 = vmatpush3.bf16.xpose.msk.msra.mxu1 %vm2529_vm1, %v1589_v39  ;;  %1591 = vmatpush3.bf16.xpose.msk.msra.mxu0 %vm2529_vm1, %v1589_v39 }
  0xcc   : > { %1625 = vmatprep.subr.msk.bf16.mxu1 %vm2529_vm1, %v1592_v40  ;;  %1594 = vmatprep.subr.msk.bf16.mxu0 %vm2529_vm1, %v1592_v40 }
  0xd3   : > { %1633 = vmatpush3.bf16.xpose.msk.msra.mxu1 %vm2529_vm1, %v1595_v45  ;;  %1597 = vmatpush3.bf16.xpose.msk.msra.mxu0 %vm2529_vm1, %v1595_v45 }
  0xd4   : > { %1626 = vmatprep.subr.msk.bf16.mxu1 %vm2529_vm1, %v1598_v46  ;;  %1600 = vmatprep.subr.msk.bf16.mxu0 %vm2529_vm1, %v1598_v46 }
  0xdb   : > { %1634 = vmatpush3.bf16.xpose.msk.msra.mxu1 %vm2529_vm1, %v1601_v51  ;;  %1603 = vmatpush3.bf16.xpose.msk.msra.mxu0 %vm2529_vm1, %v1601_v51 }
  0xdc   : > { %1627 = vmatprep.subr.msk.bf16.mxu1 %vm2529_vm1, %v1604_v52  ;;  %1606 = vmatprep.subr.msk.bf16.mxu0 %vm2529_vm1, %v1604_v52 }
  0xe3   : > { %1635 = vmatpush3.bf16.xpose.msk.msra.mxu1 %vm2529_vm1, %v1607_v57  ;;  %1609 = vmatpush3.bf16.xpose.msk.msra.mxu0 %vm2529_vm1, %v1607_v57 }
  0xe4   : > { %1628 = vmatprep.subr.msk.bf16.mxu1 %vm2529_vm1, %v1610_v58  ;;  %1612 = vmatprep.subr.msk.bf16.mxu0 %vm2529_vm1, %v1610_v58 }
  0xeb   : > { %1636 = vmatpush3.bf16.xpose.msk.msra.mxu1 %vm2529_vm1, %v1613_v63  ;;  %1615 = vmatpush3.bf16.xpose.msk.msra.mxu0 %vm2529_vm1, %v1613_v63 }
  0xec   : > { %1629 = vmatprep.subr.msk.bf16.mxu1 %vm2529_vm1, %v1616_v0  ;;  %1618 = vmatprep.subr.msk.bf16.mxu0 %vm2529_vm1, %v1616_v0 }
  0xf3   : > { %1637 = vmatpush3.bf16.xpose.msk.msra.mxu1 %vm2529_vm1, %v1619_v3  ;;  %1621 = vmatpush3.bf16.xpose.msk.msra.mxu0 %vm2529_vm1, %v1619_v3 }
  0xfa   : > { %1571 = vmatmul.mubr.msk.f32.vlgmr.msra.gmra.mrb[0].mxu1 %vm807_vm0, %v2499_v12  ;;  %1567 = vmatmul.mubr.msk.f32.vlgmr.msra.gmra.mrb[0].mxu0 %vm807_vm0, %v2504_v13 }
  0xfb   : > { %1572 = vmatprep.mubr.msk.f32.mxu1 %vm807_vm0, %v750_v4  ;;  %1568 = vmatprep.mubr.msk.f32.mxu0 %vm807_vm0, %v748_v5 }
  0xfe   : > { %1573 = vmatmul.mubr.msk.f32.gmra.mrb[2].mxu1 %vm807_vm0, %v750_v4  ;;  %1569 = vmatmul.mubr.msk.f32.gmra.mrb[2].mxu0 %vm807_vm0, %v748_v5 }
 0x12e   : > { %v790_v6 = vpop.permute.xlu1 %789  ;;  %v800_v7 = vpop.permute.xlu0 %799 }
 0x132   : > { %v795_v16 = vpop.permute.xlu1 %794  ;;  %v805_v18 = vpop.permute.xlu0 %804 }
 0x1cd   : > { %v994_v8 = vpop.f32.mrb[0].mxu1  ;;  %v982_v9 = vpop.f32.mrb[0].mxu0 }
 0x1ce   : > { %v2649_v10 = vadd.f32 %v994_v8, %v800_v7  ;;  %v996_v11 = vpop.f32.mrb[1].mxu1  ;;  %v2651_v12 = vadd.f32 %v982_v9, %v790_v6  ;;  %v984_v13 = vpop.f32.mrb[1].mxu0 }
 0x1cf   : > { %v2653_v14 = vadd.f32 %v996_v11, %v800_v7  ;;  %v2655_v15 = vadd.f32 %v984_v13, %v790_v6 }
 0x1d0   : > { %v1009_v17 = vand.u32 2147483647, %v2649_v10  ;;  %1065 = vst [vmem:[%s2659_s19] sm:$0xff] %v2651_v12  ;;  %v1005_v55 = vmax.f32 %v2649_v10, 0.0 }
 0x1d1   : > { %v1010_v19 = vand.u32 2147483647, %v2653_v14  ;;  %v1000_v20 = vpop.f32.mrb[2].mxu1  ;;  %1066 = vst [vmem:[%s2659_s19 + $0x8] sm:$0xff] %v2655_v15  ;;  %v988_v21 = vpop.f32.mrb[2].mxu0  ;;  %v1006_v1 = vmax.f32 %v2653_v14, 0.0 }
 0x1d2   : > { %v1013_v22 = vsub.f32 0.0, %v1009_v17  ;;  %v2666_v23 = vadd.f32 %v1000_v20, %v805_v18  ;;  %v1002_v24 = vpop.f32.mrb[3].mxu1  ;;  %v2668_v25 = vadd.f32 %v988_v21, %v795_v16  ;;  %v990_v26 = vpop.f32.mrb[3].mxu0 }
 0x1d3   : > { %v1014_v27 = vsub.f32 0.0, %v1010_v19  ;;  %v2670_v28 = vadd.f32 %v1002_v24, %v805_v18  ;;  %v2672_v29 = vadd.f32 %v990_v26, %v795_v16 }
 0x1d4   : > { %v1017_v30 = vmul.f32 1.442695, %v1013_v22  ;;  %v1011_v31 = vand.u32 2147483647, %v2666_v23  ;;  %1067 = vst [vmem:[%s2659_s19 + $0x10] sm:$0xff] %v2668_v25  ;;  %v1007_v8 = vmax.f32 %v2666_v23, 0.0 }
 0x1d5   : > { %v1019_v32 = vmul.f32 1.442695, %v1014_v27  ;;  %v1012_v33 = vand.u32 2147483647, %v2670_v28  ;;  %1068 = vst [vmem:[%s2659_s19 + $0x18] sm:$0xff] %v2672_v29  ;;  %v1008_v18 = vmax.f32 %v2670_v28, 0.0 }
 0x1d6   : > { %1823 = vpow2.f32 %v1017_v30  ;;  %v1015_v34 = vsub.f32 0.0, %v1011_v31  ;;  %v1073_v30 = vld [vmem:[%s667_s9] sm:$0xff] }
 0x1d7   : > { %1825 = vpow2.f32 %v1019_v32  ;;  %v1016_v35 = vsub.f32 0.0, %v1012_v33  ;;  %v1074_v33 = vld [vmem:[%s667_s9 + $0x8] sm:$0xff] }
 0x1d8   : > { %v1021_v36 = vmul.f32 1.442695, %v1015_v34 }
 0x1d9   : > { %v1023_v37 = vmul.f32 1.442695, %v1016_v35 }
 0x1da   : > { %1827 = vpow2.f32 %v1021_v36 }
 0x1db   : > { %1829 = vpow2.f32 %v1023_v37 }
 0x1e0   : > { %v1824_v38 = vpop.eup %1823 }
 0x1e1   : > { %v1826_v39 = vpop.eup %1825  ;;  %v1025_v40 = vadd.f32 1.0, %v1824_v38  ;;  %v1028_v45 = vmul.f32 -0.5, %v1824_v38  ;;  %v1031_v49 = vand.u32 2147483647, %v1824_v38 }
 0x1e2   : > { %v1034_v41 = vadd.f32 1.0, %v1826_v39  ;;  %v1037_v47 = vmul.f32 -0.5, %v1826_v39  ;;  %v1040_v53 = vand.u32 2147483647, %v1826_v39 }
 0x1e3   : > { %1831 = vlog2.f32 %v1025_v40  ;;  %v1029_v48 = vadd.f32 1.0, %v1028_v45  ;;  %vm1032_vm2 = vcmp.lt.f32.partialorder %v1031_v49, 0.0004427343 }
 0x1e4   : > { %v1828_v42 = vpop.eup %1827  ;;  %1833 = vlog2.f32 %v1034_v41  ;;  %v1038_v51 = vadd.f32 1.0, %v1037_v47  ;;  %vm1041_vm3 = vcmp.lt.f32.partialorder %v1040_v53, 0.0004427343 }
 0x1e5   : > { %v1830_v43 = vpop.eup %1829  ;;  %v1043_v44 = vadd.f32 1.0, %v1828_v42  ;;  %v1046_v50 = vmul.f32 -0.5, %v1828_v42  ;;  %v1030_v58 = vmul.f32 %v1824_v38, %v1029_v48  ;;  %v1049_v62 = vand.u32 2147483647, %v1828_v42  ;;  %v1076_v48 = vld [vmem:[%s667_s9 + $0x18] sm:$0xff] }
 0x1e6   : > { %v1052_v46 = vadd.f32 1.0, %v1830_v43  ;;  %v1055_v52 = vmul.f32 -0.5, %v1830_v43  ;;  %v1039_v61 = vmul.f32 %v1826_v39, %v1038_v51  ;;  %v1058_v2 = vand.u32 2147483647, %v1830_v43 }
 0x1e7   : > { %1835 = vlog2.f32 %v1043_v44  ;;  %v1047_v59 = vadd.f32 1.0, %v1046_v50  ;;  %vm1050_vm4 = vcmp.lt.f32.partialorder %v1049_v62, 0.0004427343 }
 0x1e8   : > { %1837 = vlog2.f32 %v1052_v46  ;;  %v1056_v63 = vadd.f32 1.0, %v1055_v52  ;;  %vm1059_vm5 = vcmp.lt.f32.partialorder %v1058_v2, 0.0004427343 }
 0x1e9   : > { %v1048_v10 = vmul.f32 %v1828_v42, %v1047_v59 }
 0x1ea   : > { %v1057_v14 = vmul.f32 %v1830_v43, %v1056_v63  ;;  %v1075_v43 = vld [vmem:[%s667_s9 + $0x10] sm:$0xff] }
 0x1ed   : > { %v1832_v54 = vpop.eup %1831 }
 0x1ee   : > { %v1834_v56 = vpop.eup %1833  ;;  %v1027_v57 = vmul.f32 0.6931472, %v1832_v54 }
 0x1ef   : > { %v1036_v60 = vmul.f32 0.6931472, %v1834_v56 }
 0x1f0   : > { %v1033_v0 = vsel %vm1032_vm2, %v1030_v58, %v1027_v57 }
 0x1f1   : > { %v1836_v3 = vpop.eup %1835  ;;  %v1061_v4 = vadd.f32 %v1033_v0, %v1005_v55  ;;  %v1042_v5 = vsel %vm1041_vm3, %v1039_v61, %v1036_v60 }
 0x1f2   : > { %v1838_v6 = vpop.eup %1837  ;;  %v1062_v7 = vadd.f32 %v1042_v5, %v1006_v1  ;;  %v1045_v9 = vmul.f32 0.6931472, %v1836_v3 }
 0x1f3   : > { %1069 = vst [vmem:[%s2684_s28] sm:$0xff] %v1061_v4  ;;  %v1077_v11 = vadd.f32 1e-10, %v1061_v4  ;;  %v1054_v13 = vmul.f32 0.6931472, %v1838_v6 }
 0x1f4   : > { %1070 = vst [vmem:[%s2684_s28 + $0x8] sm:$0xff] %v1062_v7  ;;  %v1078_v16 = vadd.f32 1e-10, %v1062_v7  ;;  %v1051_v17 = vsel %vm1050_vm4, %v1048_v10, %v1045_v9 }
 0x1f5   : > { %v1063_v19 = vadd.f32 %v1051_v17, %v1007_v8  ;;  %v1060_v20 = vsel %vm1059_vm5, %v1057_v14, %v1054_v13  ;;  %1839 = vrsqrt.f32 %v1077_v11  ;;  %vm1083_vm6 = vcmp.eq.f32.partialorder %v1077_v11, inf }
 0x1f6   : > { %v1064_v21 = vadd.f32 %v1060_v20, %v1008_v18  ;;  %1841 = vrsqrt.f32 %v1078_v16  ;;  %v1086_v28 = vand.u32 2147483648, %v1077_v11  ;;  %vm1085_vm7 = vcmp.eq.f32.partialorder %v1077_v11, 0.0 }
 0x1f7   : > { %1071 = vst [vmem:[%s2684_s28 + $0x10] sm:$0xff] %v1063_v19  ;;  %v1079_v22 = vadd.f32 1e-10, %v1063_v19  ;;  %vm1090_vm8 = vcmp.eq.f32.partialorder %v1078_v16, inf  ;;  %v1093_v34 = vand.u32 2147483648, %v1078_v16  ;;  %vm1092_vm9 = vcmp.eq.f32.partialorder %v1078_v16, 0.0 }
 0x1f8   : > { %1072 = vst [vmem:[%s2684_s28 + $0x18] sm:$0xff] %v1064_v21  ;;  %v1080_v23 = vadd.f32 1e-10, %v1064_v21 }
 0x1f9   : > { %1843 = vrsqrt.f32 %v1079_v22  ;;  %vm1097_vm10 = vcmp.eq.f32.partialorder %v1079_v22, inf  ;;  %vm1099_vm11 = vcmp.eq.f32.partialorder %v1079_v22, 0.0  ;;  %v1100_v44 = vand.u32 2147483648, %v1079_v22 }
 0x1fa   : > { %1845 = vrsqrt.f32 %v1080_v23  ;;  %vm1104_vm12 = vcmp.eq.f32.partialorder %v1080_v23, inf  ;;  %v1107_v49 = vand.u32 2147483648, %v1080_v23  ;;  %vm1106_vm13 = vcmp.eq.f32.partialorder %v1080_v23, 0.0 }
 0x1ff   : > { %v1840_v24 = vpop.eup %1839 }
 0x200   : > { %v1842_v26 = vpop.eup %1841  ;;  %v1082_v27 = vmul.f32 %v1840_v24, %v1077_v11 }
 0x201   : > { %v1089_v31 = vmul.f32 %v1842_v26, %v1078_v16 }
 0x202   : > { %v1084_v32 = vsel %vm1083_vm6, %v1077_v11, %v1082_v27 }
 0x203   : > { %v1844_v35 = vpop.eup %1843  ;;  %v1087_v36 = vsel %vm1085_vm7, %v1086_v28, %v1084_v32  ;;  %v1091_v37 = vsel %vm1090_vm8, %v1078_v16, %v1089_v31 }
 0x204   : > { %v1846_v38 = vpop.eup %1845  ;;  %v1109_v39 = vmul.f32 %v1087_v36, %v1073_v30  ;;  %v1094_v40 = vsel %vm1092_vm9, %v1093_v34, %v1091_v37  ;;  %v1096_v41 = vmul.f32 %v1844_v35, %v1079_v22 }
 0x205   : > { %v1110_v42 = vmul.f32 %v1094_v40, %v1074_v33  ;;  %v1103_v45 = vmul.f32 %v1846_v38, %v1080_v23 }
 0x206   : > { %v1113_v46 = vadd.f32 %v1109_v39, %v2651_v12  ;;  %v1098_v47 = vsel %vm1097_vm10, %v1079_v22, %v1096_v41 }
 0x207   : > { %v1114_v50 = vadd.f32 %v1110_v42, %v2655_v15  ;;  %v1101_v51 = vsel %vm1099_vm11, %v1100_v44, %v1098_v47  ;;  %v1105_v52 = vsel %vm1104_vm12, %v1080_v23, %v1103_v45  ;;  %1138 = sbr.rel (!%p2185_p6) target bundleno = 555 (0x22b), region = 106 }
 0x208   : > { %1117 = vst [vmem:[%s2695_s3] sm:$0xff] %v1113_v46  ;;  %v1111_v53 = vmul.f32 %v1101_v51, %v1075_v43  ;;  %v1108_v12 = vsel %vm1106_vm13, %v1107_v49, %v1105_v52 }
 0x209   : > { %1118 = vst [vmem:[%s2695_s3 + $0x8] sm:$0xff] %v1114_v50  ;;  %v1112_v54 = vmul.f32 %v1108_v12, %v1076_v48 }
 0x20a   : > { %v1115_v55 = vadd.f32 %v1111_v53, %v2668_v25 }
 0x20b   : > { %v1116_v56 = vadd.f32 %v1112_v54, %v2672_v29 }
 0x20c   : > { %1119 = vst [vmem:[%s2695_s3 + $0x10] sm:$0xff] %v1115_v55 }
 0x20d   : > { %1120 = vst [vmem:[%s2695_s3 + $0x18] sm:$0xff] %v1116_v56 }
 0x20e   : > { %s2924_s30 = smov (!%p1141_p10, %s1140_s30), 2 }
 0x20f   : > { %s2717_s29 = sshll.u32 %s2924_s30, 8 }
 0x210   : > { %s1145_s23 = ssub.s32 512, %s2717_s29 }
 0x211   : > { %1146 = vsyncadd %s2705_s15, %s1145_s23  ;;  %p1499_p11 = scmp.ne.s32.totalorder %s2717_s29, 0  ;;  %s1525_s13 = sshll.u32 %s2167_s25, 8 }
 0x212   : > { %s2726_s27 = scalar_lea.hbm %s2879_s4, %s1525_s13  ;;  %s1501_s20 = sshll.u32 %s2924_s30, 3 }
 0x213   : > { %s1152_s10 = sshll.u32 %s2659_s19, 4  ;;  %s2102_s16 = smov [#allocation3]   ;;  %s2730_s10 = int_to_ptr.vmem [resolvable:$true] %s1152_s10 }
 0x214   : > { %s1847_s11 = scalar_lea.vmem %s2730_s10, %s2717_s29  ;;  %s1851_s18 = sshll.u32 %s2102_s16, 4  ;;  %s1852_s18 = int_to_ptr.vmem [resolvable:$false] %s1851_s18 }
 0x215   : > { %p1848_p12 = scmp.ne.s32.totalorder %s2730_s10, %s1847_s11  ;;  %s1853_s9 = scalar_lea.vmem %s1852_s18, 1024 }
 0x216   : > { %p1854_p1 = scmp.lt.s32.totalorder %s2730_s10, %s1852_s18  ;;  %p1855_p2 = scmp.lt.s32.totalorder %s1853_s9, %s1847_s11 }
 0x217   : > { %p1849_p13 = pnand %p1848_p12, %p1499_p11 }
 0x218   : > { %p1856_p3 = por %p1855_p2, %p1854_p1 }
 0x219   : > { %p1850_p0 = pneg %p1849_p13 }
 0x21b   : > { %p1857_p4 = pnand %p1856_p3, %p1850_p0 }
 0x21d   : > { %1860 = shalt.err (!%p1857_p4)
}
 0x21e   : > { %s1861_s19 = scalar_lea.hbm %s2726_s27, %s2717_s29  ;;  %s1865_s13 = scalar_lea.hbm %s2879_s4, 768 }
 0x21f   : > { %p1862_p5 = scmp.ne.s32.totalorder %s2726_s27, %s1861_s19  ;;  %p1866_p12 = scmp.lt.u32.totalorder %s2726_s27, %s2879_s4 }
 0x220   : > { %p1867_p13 = scmp.lt.u32.totalorder %s1865_s13, %s1861_s19  ;;  %p1869_p1 = scmp.lt.u32.totalorder %s1861_s19, %s2726_s27 }
 0x221   : > { %p1863_p7 = pnand %p1862_p5, %p1499_p11 }
 0x222   : > { %p1868_p0 = por %p1867_p13, %p1866_p12 }
 0x223   : > { %p1864_p10 = pneg %p1863_p7 }
 0x224   : > { %p1870_p2 = por %p1869_p1, %p1868_p0 }
 0x226   : > { %p1871_p3 = pnand %p1870_p2, %p1864_p10 }
 0x228   : > { %1874 = shalt.err (!%p1871_p3)
}
 0x229   : > { %s2103_s11 = smov 256   ;;  %s2104_s16 = smov 384  }
 0x22a   : > { %1158 = dma.vmem_to_hbm [thread:$0]  (%p1499_p11), %s2730_s10, %s2717_s29, %s2726_s27, %s2705_s15, %s2103_s11, %s2104_s16, %s1501_s20  }
 0x22b PF: > { %1161 = sbr.rel (!%p2185_p6) target bundleno = 591 (0x24f), region = 110  ;;  %s1504_s18 = sshll.u32 (%p2185_p6), %s2167_s25, 1 }
 0x22c   : > { %s1163_s9 = ssub.s32 (%p2185_p6), 3, %s1504_s18 }
 0x22d   : > { %p1164_p4 = scmp.lt.s32.totalorder (%p2185_p6), %s1163_s9, 2 }
 0x232   : > { %s2926_s9 = smov (!%p1164_p4, %s1163_s9), 2 }
 0x233   : > { %s2765_s19 = sshll.u32 %s2926_s9, 8 }
 0x234   : > { %s1168_s26 = ssub.s32 512, %s2765_s19 }
 0x235   : > { %1169 = vsyncadd %s2709_s12, %s1168_s26  ;;  %p1506_p11 = scmp.ne.s32.totalorder %s2765_s19, 0  ;;  %s1528_s15 = sshll.u32 %s2167_s25, 8 }
 0x236   : > { %s2774_s27 = scalar_lea.hbm %s2880_s5, %s1528_s15  ;;  %s1508_s20 = sshll.u32 %s2926_s9, 3 }
 0x237   : > { %s1175_s10 = sshll.u32 %s2684_s28, 4  ;;  %s2105_s13 = smov [#allocation5]   ;;  %s2778_s10 = int_to_ptr.vmem [resolvable:$true] %s1175_s10 }
 0x238   : > { %s1875_s23 = scalar_lea.vmem %s2778_s10, %s2765_s19  ;;  %s1879_s14 = sshll.u32 %s2105_s13, 4  ;;  %s1880_s14 = int_to_ptr.vmem [resolvable:$false] %s1879_s14 }
 0x239   : > { %p1876_p5 = scmp.ne.s32.totalorder %s2778_s10, %s1875_s23  ;;  %s1881_s17 = scalar_lea.vmem %s1880_s14, 1024 }
 0x23a   : > { %p1882_p12 = scmp.lt.s32.totalorder %s2778_s10, %s1880_s14  ;;  %p1883_p13 = scmp.lt.s32.totalorder %s1881_s17, %s1875_s23 }
 0x23b   : > { %p1877_p7 = pnand %p1876_p5, %p1506_p11 }
 0x23c   : > { %p1884_p0 = por %p1883_p13, %p1882_p12 }
 0x23d   : > { %p1878_p10 = pneg %p1877_p7 }
 0x23f   : > { %p1885_p1 = pnand %p1884_p0, %p1878_p10 }
 0x241   : > { %1888 = shalt.err (!%p1885_p1)
}
 0x242   : > { %s1889_s28 = scalar_lea.hbm %s2774_s27, %s2765_s19  ;;  %s1893_s18 = scalar_lea.hbm %s2880_s5, 768 }
 0x243   : > { %p1890_p2 = scmp.ne.s32.totalorder %s2774_s27, %s1889_s28  ;;  %p1894_p5 = scmp.lt.u32.totalorder %s2774_s27, %s2880_s5 }
 0x244   : > { %p1895_p7 = scmp.lt.u32.totalorder %s1893_s18, %s1889_s28  ;;  %p1897_p12 = scmp.lt.u32.totalorder %s1889_s28, %s2774_s27 }
 0x245   : > { %p1891_p3 = pnand %p1890_p2, %p1506_p11 }
 0x246   : > { %p1896_p10 = por %p1895_p7, %p1894_p5 }
 0x247   : > { %p1892_p4 = pneg %p1891_p3 }
 0x248   : > { %p1898_p13 = por %p1897_p12, %p1896_p10 }
 0x24a   : > { %p1899_p0 = pnand %p1898_p13, %p1892_p4 }
 0x24c   : > { %1902 = shalt.err (!%p1899_p0)
}
 0x24d   : > { %s2106_s30 = smov 256   ;;  %s2107_s29 = smov 384  }
 0x24e   : > { %1181 = dma.vmem_to_hbm [thread:$0]  (%p1506_p11), %s2778_s10, %s2765_s19, %s2774_s27, %s2709_s12, %s2106_s30, %s2107_s29, %s1508_s20  }
 0x24f PF: > { %1184 = sbr.rel (!%p2185_p6) target bundleno = 627 (0x273), region = 114  ;;  %s1511_s23 = sshll.u32 (%p2185_p6), %s2167_s25, 1 }
 0x250   : > { %s1186_s13 = ssub.s32 (%p2185_p6), 3, %s1511_s23 }
 0x251   : > { %p1187_p1 = scmp.lt.s32.totalorder (%p2185_p6), %s1186_s13, 2 }
 0x256   : > { %s2928_s13 = smov (!%p1187_p1, %s1186_s13), 2 }
 0x257   : > { %s2813_s14 = sshll.u32 %s2928_s13, 8 }
 0x258   : > { %s1191_s17 = ssub.s32 512, %s2813_s14 }
 0x259   : > { %1192 = vsyncadd %s2709_s12, %s1191_s17  ;;  %p1513_p6 = scmp.ne.s32.totalorder %s2813_s14, 0  ;;  %s1531_s7 = sshll.u32 %s2167_s25, 8 }
 0x25a   : > { %s2822_s27 = scalar_lea.hbm %s2881_s6, %s1531_s7  ;;  %s1515_s20 = sshll.u32 %s2928_s13, 3 }
 0x25b   : > { %s1198_s10 = sshll.u32 %s2695_s3, 4  ;;  %s2108_s11 = smov [#allocation7]   ;;  %s2826_s10 = int_to_ptr.vmem [resolvable:$true] %s1198_s10 }
 0x25c   : > { %s1903_s28 = scalar_lea.vmem %s2826_s10, %s2813_s14  ;;  %s1907_s16 = sshll.u32 %s2108_s11, 4  ;;  %s1908_s16 = int_to_ptr.vmem [resolvable:$false] %s1907_s16 }
 0x25d   : > { %p1904_p11 = scmp.ne.s32.totalorder %s2826_s10, %s1903_s28  ;;  %s1909_s25 = scalar_lea.vmem %s1908_s16, 1024 }
 0x25e   : > { %p1910_p4 = scmp.lt.s32.totalorder %s2826_s10, %s1908_s16  ;;  %p1911_p5 = scmp.lt.s32.totalorder %s1909_s25, %s1903_s28 }
 0x25f   : > { %p1905_p2 = pnand %p1904_p11, %p1513_p6 }
 0x260   : > { %p1912_p7 = por %p1911_p5, %p1910_p4 }
 0x261   : > { %p1906_p3 = pneg %p1905_p2 }
 0x263   : > { %p1913_p10 = pnand %p1912_p7, %p1906_p3 }
 0x265   : > { %1916 = shalt.err (!%p1913_p10)
}
 0x266   : > { %s1917_s3 = scalar_lea.hbm %s2822_s27, %s2813_s14  ;;  %s1921_s15 = scalar_lea.hbm %s2881_s6, 768 }
 0x267   : > { %p1918_p12 = scmp.ne.s32.totalorder %s2822_s27, %s1917_s3  ;;  %p1922_p1 = scmp.lt.u32.totalorder %s2822_s27, %s2881_s6 }
 0x268   : > { %p1923_p11 = scmp.lt.u32.totalorder %s1921_s15, %s1917_s3  ;;  %p1925_p3 = scmp.lt.u32.totalorder %s1917_s3, %s2822_s27 }
 0x269   : > { %p1919_p13 = pnand %p1918_p12, %p1513_p6 }
 0x26a   : > { %p1924_p2 = por %p1923_p11, %p1922_p1 }
 0x26b   : > { %p1920_p0 = pneg %p1919_p13 }
 0x26c   : > { %p1926_p4 = por %p1925_p3, %p1924_p2 }
 0x26e   : > { %p1927_p5 = pnand %p1926_p4, %p1920_p0 }
 0x270   : > { %1930 = shalt.err (!%p1927_p5)
}
 0x271   : > { %s2109_s23 = smov 256   ;;  %s2110_s17 = smov 384  }
 0x272   : > { %1204 = dma.vmem_to_hbm [thread:$0]  (%p1513_p6), %s2826_s10, %s2813_s14, %s2822_s27, %s2709_s12, %s2109_s23, %s2110_s17, %s1515_s20  }
 0x273 PF: > { %s1213_s7 = sand.u32 1, %s2021_s21   ;;  %p1642_p7 = pnand %p1423_p9, %p2191_p8 }
 0x274   : > { %s1214_s9 = scalar_lea.sflag [#allocation4], %s1213_s7 }
 0x275   : > { %2012 = dma.done.wait (!%p1642_p7), %s1214_s9, 512  }
 0x276   : > { %2014 = vsyncadd (!%p1642_p7), %s1214_s9, 4294966784  ;;  %s2905_s19 = sadd.s32 4294967294, %s2033_s24  }
 0x277   : > { %s1222_s28 = sand.u32 1, %s2905_s19  }
 0x278   : > { %s1223_s11 = scalar_lea.sflag [#allocation6], %s1222_s28 }
 0x279   : > { %2016 = dma.done.wait (!%p1642_p7), %s1223_s11, 1024  }
 0x27a   : > { %2018 = vsyncadd (!%p1642_p7), %s1223_s11, 4294966272  ;;  %s2906_s24 = sld [smem:[#allocation11_spill]]  ;;  %s2907_s12 = sld [smem:[#allocation10_spill]] }
 0x27b   : > { %s2908_s23 = sld [smem:[#allocation12_spill]]  ;;  %s2909_s21 = smov %s2025_s22 }
 0x280   : > { %p20_p6 = scmp.ge.s32.totalorder %s2906_s24, 4   ;;  %s2910_s22 = smov %s2907_s12 }
 0x282   :  { %22 = sbr.rel (!%p20_p6) target bundleno = 7 (0x7), region = 239 }
 0x289   :  { %1237 = vsyncpa [#allocation4], 1 }
 0x28a   :  { %1239 = vsyncpa [#allocation4 + $0x1], 1 }
 0x28b   :  { %1240 = vsyncpa [#allocation6], 1 }
 0x28c   :  { %1242 = vsyncpa [#allocation6 + $0x1], 1 }

</bundles_post_ra>
